<compile_context>
chip_gen: v5e
topology: v5e:2x2
jax: 0.10.0
libtpu: 0.0.40
codegen_flags: <defaults>
</compile_context>

<pallas_src>
import jax
import jax.numpy as jnp
from jax.experimental import pallas as pl
from jax.experimental.pallas import tpu as pltpu


H_ENC = 256
H_SUB = 128
H_CAT = H_ENC + H_SUB  # 384


def _round_up(n, m):
    return ((n + m - 1) // m) * m


# --------------------------------------------------------------------------- #
# Kernel
# --------------------------------------------------------------------------- #
def _subject_invariant_kernel(x_ref, w1_ref, b1_ref, w2e_ref, b2e_ref,
                              w2s_ref, b2s_ref, ed_ref, b_ref):
    # x_ref:   (tile_m, F_pad)  bf16
    # w1_ref:  (F_pad, 384)     bf16     b1_ref:  (1, 384)    f32
    # w2e_ref: (256, F_pad)     bf16     b2e_ref: (1, F_pad)  f32
    # w2s_ref: (128, F_pad)     bf16     b2s_ref: (1, F_pad)  f32
    # ed_ref, b_ref: (tile_m, F_pad) f32
    x = x_ref[...]

    # Fused first layer for both branches: bf16 MXU matmul, f32 bias + ReLU.
    h = jnp.dot(x, w1_ref[...], preferred_element_type=jnp.float32)
    h = jnp.maximum(h + b1_ref[...], 0.0)

    # Cast back to bf16 for the second MXU pass; split at the lane-aligned
    # 256 boundary (multiple of 128 -> no cross-lane shuffle, no masking).
    h_bf = h.astype(jnp.bfloat16)
    h_enc = h_bf[:, :H_ENC]
    h_sub = h_bf[:, H_ENC:]

    ed = jnp.dot(h_enc, w2e_ref[...], preferred_element_type=jnp.float32)
    ed_ref[...] = (ed + b2e_ref[...]).astype(ed_ref.dtype)

    b = jnp.dot(h_sub, w2s_ref[...], preferred_element_type=jnp.float32)
    b_ref[...] = (b + b2s_ref[...]).astype(b_ref.dtype)


# --------------------------------------------------------------------------- #
# One-time weight pre-packing (pad to 128 lanes, fuse layer-1, cast to bf16)
# --------------------------------------------------------------------------- #
def prepack_params(params, feature_dim):
    feat = feature_dim
    f_pad = _round_up(feat, 128)
    wdt = jnp.bfloat16

    # Fused first-layer weights: (F_pad, 384); bias (1, 384) f32.
    w1_cat = jnp.zeros((f_pad, H_CAT), wdt)
    w1_cat = w1_cat.at[:feat, :H_ENC].set(params["enc_w1"].astype(wdt))
    w1_cat = w1_cat.at[:feat, H_ENC:].set(params["sub_w1"].astype(wdt))
    b1_cat = jnp.concatenate(
        [params["enc_b1"], params["sub_b1"]], axis=1).astype(jnp.float32)

    # Separate, lane-padded second-layer weights (no block-diagonal zeros).
    w2e = jnp.zeros((H_ENC, f_pad), wdt).at[:, :feat].set(
        params["enc_w2"].astype(wdt))
    w2s = jnp.zeros((H_SUB, f_pad), wdt).at[:, :feat].set(
        params["sub_w2"].astype(wdt))
    b2e = jnp.zeros((1, f_pad), jnp.float32).at[:, :feat].set(
        params["enc_b2"].astype(jnp.float32))
    b2s = jnp.zeros((1, f_pad), jnp.float32).at[:, :feat].set(
        params["sub_b2"].astype(jnp.float32))

    return dict(w1_cat=w1_cat, b1_cat=b1_cat, w2e=w2e, b2e=b2e,
                w2s=w2s, b2s=b2s, feat=feat, f_pad=f_pad)


def _pick_tile_m(batch8, f_pad):
    # Cap batch tiles so double-buffered x/out tiles stay inside scoped VMEM
    # at large feature_dim (v7x: 64 MiB physical / 32 MiB default scoped);
    # v6e's 128 MiB tolerates the larger 512 tile.
    cap = 512 if f_pad <= 1024 else 256
    if batch8 <= 8:
        return 8
    if batch8 <= cap:
        # Split into >= 2 tiles so the "parallel" grid axis can shard across
        # both v7x TensorCores even for moderate batches.
        return _round_up((batch8 + 1) // 2, 8)
    return cap


# --------------------------------------------------------------------------- #
# Forward wrapper
# --------------------------------------------------------------------------- #
def subject_invariant_forward(x, packed):
    """x: (batch, feature_dim) float32; packed: output of prepack_params.

    Returns (Ed, B), each (batch, feature_dim) float32.
    """
    batch = x.shape[0]
    feat = packed["feat"]
    f_pad = packed["f_pad"]

    batch8 = _round_up(batch, 8)
    tile_m = _pick_tile_m(batch8, f_pad)
    batch_pad = _round_up(batch8, tile_m)
    grid_m = batch_pad // tile_m

    # Pad activations; zero rows/lanes are neutral (padded W1 rows are zero).
    x_pad = jnp.zeros((batch_pad, f_pad), jnp.bfloat16)
    x_pad = x_pad.at[:batch, :feat].set(x.astype(jnp.bfloat16))

    w1, b1 = packed["w1_cat"], packed["b1_cat"]
    w2e, b2e = packed["w2e"], packed["b2e"]
    w2s, b2s = packed["w2s"], packed["b2s"]

    # Explicit VMEM budget (default scoped limit is 16/32 MiB, well below
    # physical; size it from the real footprint, capped at v7x's 64 MiB).
    weight_bytes = 2 * (w1.size + w2e.size + w2s.size) \
        + 4 * (b1.size + b2e.size + b2s.size)
    tile_bytes = tile_m * f_pad * (2 + 2 * 4)          # bf16 x + two f32 outs
    est = 2 * weight_bytes + 2 * tile_bytes            # worst-case 2x buffering
    vmem_limit = int(min(max(est + (8 << 20), 32 << 20), 64 << 20))

    # Cost estimate (layer-2 flops no longer doubled; bf16 operand bytes).
    flops = 4 * batch_pad * H_CAT * f_pad
    bytes_accessed = (2 * x_pad.size + weight_bytes
                      + 4 * 2 * batch_pad * f_pad)
    cost = pl.CostEstimate(flops=flops, transcendentals=0,
                           bytes_accessed=bytes_accessed)

    out_shape = (jax.ShapeDtypeStruct((batch_pad, f_pad), jnp.float32),
                 jax.ShapeDtypeStruct((batch_pad, f_pad), jnp.float32))

    def _call(weight_mode):
        def wspec(shape):
            if weight_mode is None:
                return pl.BlockSpec(shape, lambda i: (0, 0))
            return pl.BlockSpec(shape, lambda i: (0, 0),
                                pipeline_mode=weight_mode)

        return pl.pallas_call(
            _subject_invariant_kernel,
            out_shape=out_shape,
            grid=(grid_m,),
            in_specs=[
                pl.BlockSpec((tile_m, f_pad), lambda i: (i, 0)),  # x tile
                wspec((f_pad, H_CAT)),                            # W1 (resident)
                wspec((1, H_CAT)),                                # b1
                wspec((H_ENC, f_pad)),                            # W2 encoder
                wspec((1, f_pad)),                                # b2 encoder
                wspec((H_SUB, f_pad)),                            # W2 subject
                wspec((1, f_pad)),                                # b2 subject
            ],
            out_specs=(
                pl.BlockSpec((tile_m, f_pad), lambda i: (i, 0)),  # Ed
                pl.BlockSpec((tile_m, f_pad), lambda i: (i, 0)),  # B
            ),
            compiler_params=pltpu.CompilerParams(
                dimension_semantics=("parallel",),
                vmem_limit_bytes=vmem_limit),
            cost_estimate=cost,
        )(x_pad, w1, b1, w2e, b2e, w2s, b2s)

    try:
        # Constant-index weights: request single buffering to reclaim VMEM.
        ed_pad, b_pad = _call(pl.Buffered(1))
    except Exception:
        # Fallback if this JAX build does not honor pipeline_mode here.
        ed_pad, b_pad = _call(None)

    # TODO(synk): for very large feature_dim (F_pad >~ 8k), add a second
    # "parallel" grid axis over output columns (tile_n ~512-1024) with an
    # h scratch computed under @pl.when(j == 0) to cap per-step W2 footprint.

    ed = ed_pad[:batch, :feat]
    b = b_pad[:batch, :feat]
    return ed, b


# --------------------------------------------------------------------------- #
# Synthetic params + pure-JAX reference
# --------------------------------------------------------------------------- #
def init_params(key, feature_dim):
    """Deterministic synthetic params (PyTorch-Linear-like uniform init)."""
    def linear(key, fan_in, fan_out):
        kw, kb = jax.random.split(key)
        bound = 1.0 / jnp.sqrt(fan_in)
        w = jax.random.uniform(kw, (fan_in, fan_out), jnp.float32, -bound, bound)
        b = jax.random.uniform(kb, (1, fan_out), jnp.float32, -bound, bound)
        return w, b

    k1, k2, k3, k4 = jax.random.split(key, 4)
    enc_w1, enc_b1 = linear(k1, feature_dim, H_ENC)
    enc_w2, enc_b2 = linear(k2, H_ENC, feature_dim)
    sub_w1, sub_b1 = linear(k3, feature_dim, H_SUB)
    sub_w2, sub_b2 = linear(k4, H_SUB, feature_dim)
    return dict(
        enc_w1=enc_w1, enc_b1=enc_b1, enc_w2=enc_w2, enc_b2=enc_b2,
        sub_w1=sub_w1, sub_b1=sub_b1, sub_w2=sub_w2, sub_b2=sub_b2,
    )


def reference_forward(x, p):
    """Pure-JAX f32 reference (mirrors the PyTorch module)."""
    h = jnp.maximum(x @ p["enc_w1"] + p["enc_b1"], 0.0)
    ed = h @ p["enc_w2"] + p["enc_b2"]
    h2 = jnp.maximum(x @ p["sub_w1"] + p["sub_b1"], 0.0)
    b = h2 @ p["sub_w2"] + p["sub_b2"]
    return ed, b


if __name__ == "__main__":
    key = jax.random.PRNGKey(0)
    k_x, k_p = jax.random.split(key)

    batch, feature_dim = 8, 32
    x = jax.random.normal(k_x, (batch, feature_dim), dtype=jnp.float32)
    params = init_params(k_p, feature_dim)

    packed = prepack_params(params, feature_dim)       # one-time pre-pack
    ed, b = subject_invariant_forward(x, packed)
    ed, b = jax.block_until_ready((ed, b))

    ed_ref, b_ref = reference_forward(x, params)
    assert ed.shape == ed_ref.shape and b.shape == b_ref.shape
    # bf16 MXU operands with f32 accumulation -> relaxed tolerance vs f32 ref.
    assert jnp.allclose(ed, ed_ref, atol=5e-2, rtol=5e-2), "Ed mismatch"
    assert jnp.allclose(b, b_ref, atol=5e-2, rtol=5e-2), "B mismatch"

    print("KERNEL_OK")
</pallas_src>

<mosaic_0001>
module attributes {stable_mosaic.version = 11 : i64} {
  func.func @_subject_invariant_kernel(%arg0: i32, %arg1: memref<8x128xbf16, #tpu.memory_space<vmem>>, %arg2: memref<128x384xbf16, #tpu.memory_space<vmem>>, %arg3: memref<1x384xf32, #tpu.memory_space<vmem>>, %arg4: memref<256x128xbf16, #tpu.memory_space<vmem>>, %arg5: memref<1x128xf32, #tpu.memory_space<vmem>>, %arg6: memref<128x128xbf16, #tpu.memory_space<vmem>>, %arg7: memref<1x128xf32, #tpu.memory_space<vmem>>, %arg8: memref<8x128xf32, #tpu.memory_space<vmem>>, %arg9: memref<8x128xf32, #tpu.memory_space<vmem>>) attributes {dimension_semantics = [#tpu.dimension_semantics<parallel>], iteration_bounds = array<i64: 1>, scalar_prefetch = 0 : i64, scratch_operands = 0 : i64, tpu.core_type = #tpu.core_type<tc>, window_params = [{transform_indices = @transform_0, window_bounds = array<i64: 8, 128>}, {pipeline_mode = #tpu.pipeline_mode<synchronous>, transform_indices = @transform_1, window_bounds = array<i64: 128, 384>}, {pipeline_mode = #tpu.pipeline_mode<synchronous>, transform_indices = @transform_2, window_bounds = array<i64: 1, 384>}, {pipeline_mode = #tpu.pipeline_mode<synchronous>, transform_indices = @transform_3, window_bounds = array<i64: 256, 128>}, {pipeline_mode = #tpu.pipeline_mode<synchronous>, transform_indices = @transform_4, window_bounds = array<i64: 1, 128>}, {pipeline_mode = #tpu.pipeline_mode<synchronous>, transform_indices = @transform_5, window_bounds = array<i64: 128, 128>}, {pipeline_mode = #tpu.pipeline_mode<synchronous>, transform_indices = @transform_6, window_bounds = array<i64: 1, 128>}, {transform_indices = @transform_7, window_bounds = array<i64: 8, 128>}, {transform_indices = @transform_8, window_bounds = array<i64: 8, 128>}]} {
    %c0 = arith.constant 0 : index
    %c0_0 = arith.constant 0 : index
    %0 = vector.load %arg1[%c0, %c0_0] : memref<8x128xbf16, #tpu.memory_space<vmem>>, vector<8x128xbf16>
    %c0_1 = arith.constant 0 : index
    %c0_2 = arith.constant 0 : index
    %1 = vector.load %arg2[%c0_1, %c0_2] : memref<128x384xbf16, #tpu.memory_space<vmem>>, vector<128x384xbf16>
    %cst = arith.constant dense<0.000000e+00> : vector<8x384xf32>
    %2 = tpu.matmul %0, %1, %cst {dimension_numbers = #tpu.dot_dimension_numbers<[1], [0], [0], [1], [0, 0, 1, 1], [], []>} : vector<8x128xbf16>, vector<128x384xbf16>, vector<8x384xf32> -> vector<8x384xf32>
    %c0_3 = arith.constant 0 : index
    %c0_4 = arith.constant 0 : index
    %3 = vector.load %arg3[%c0_3, %c0_4] : memref<1x384xf32, #tpu.memory_space<vmem>>, vector<1x384xf32>
    %4 = vector.broadcast %3 : vector<1x384xf32> to vector<8x384xf32>
    %5 = arith.addf %2, %4 : vector<8x384xf32>
    %cst_5 = arith.constant 0.000000e+00 : f32
    %6 = vector.broadcast %cst_5 : f32 to vector<8x384xf32>
    %7 = arith.maximumf %5, %6 : vector<8x384xf32>
    %8 = arith.truncf %7 : vector<8x384xf32> to vector<8x384xbf16>
    %9 = vector.extract_strided_slice %8 {offsets = [0, 0], sizes = [8, 256], strides = [1, 1]} : vector<8x384xbf16> to vector<8x256xbf16>
    %10 = vector.extract_strided_slice %8 {offsets = [0, 256], sizes = [8, 128], strides = [1, 1]} : vector<8x384xbf16> to vector<8x128xbf16>
    %c0_6 = arith.constant 0 : index
    %c0_7 = arith.constant 0 : index
    %11 = vector.load %arg4[%c0_6, %c0_7] : memref<256x128xbf16, #tpu.memory_space<vmem>>, vector<256x128xbf16>
    %cst_8 = arith.constant dense<0.000000e+00> : vector<8x128xf32>
    %12 = tpu.matmul %9, %11, %cst_8 {dimension_numbers = #tpu.dot_dimension_numbers<[1], [0], [0], [1], [0, 0, 1, 1], [], []>} : vector<8x256xbf16>, vector<256x128xbf16>, vector<8x128xf32> -> vector<8x128xf32>
    %c0_9 = arith.constant 0 : index
    %c0_10 = arith.constant 0 : index
    %13 = vector.load %arg5[%c0_9, %c0_10] : memref<1x128xf32, #tpu.memory_space<vmem>>, vector<1x128xf32>
    %14 = vector.broadcast %13 : vector<1x128xf32> to vector<8x128xf32>
    %15 = arith.addf %12, %14 : vector<8x128xf32>
    %c0_11 = arith.constant 0 : index
    %c0_12 = arith.constant 0 : index
    %16 = vector.load %arg8[%c0_11, %c0_12] : memref<8x128xf32, #tpu.memory_space<vmem>>, vector<8x128xf32>
    tpu.vector_store %arg8[%c0_11, %c0_12], %15 {strides = array<i32>} : memref<8x128xf32, #tpu.memory_space<vmem>>, vector<8x128xf32>,
    %c0_13 = arith.constant 0 : index
    %c0_14 = arith.constant 0 : index
    %17 = vector.load %arg6[%c0_13, %c0_14] : memref<128x128xbf16, #tpu.memory_space<vmem>>, vector<128x128xbf16>
    %cst_15 = arith.constant dense<0.000000e+00> : vector<8x128xf32>
    %18 = tpu.matmul %10, %17, %cst_15 {dimension_numbers = #tpu.dot_dimension_numbers<[1], [0], [0], [1], [0, 0, 1, 1], [], []>} : vector<8x128xbf16>, vector<128x128xbf16>, vector<8x128xf32> -> vector<8x128xf32>
    %c0_16 = arith.constant 0 : index
    %c0_17 = arith.constant 0 : index
    %19 = vector.load %arg7[%c0_16, %c0_17] : memref<1x128xf32, #tpu.memory_space<vmem>>, vector<1x128xf32>
    %20 = vector.broadcast %19 : vector<1x128xf32> to vector<8x128xf32>
    %21 = arith.addf %18, %20 : vector<8x128xf32>
    %c0_18 = arith.constant 0 : index
    %c0_19 = arith.constant 0 : index
    %22 = vector.load %arg9[%c0_18, %c0_19] : memref<8x128xf32, #tpu.memory_space<vmem>>, vector<8x128xf32>
    tpu.vector_store %arg9[%c0_18, %c0_19], %21 {strides = array<i32>} : memref<8x128xf32, #tpu.memory_space<vmem>>, vector<8x128xf32>,
    return
  }
  func.func @transform_0(%arg0: i32) -> (i32, i32) {
    %c0_i32 = arith.constant 0 : i32
    %c0_i32_0 = arith.constant 0 : i32
    return %arg0, %c0_i32 : i32, i32
  }
  func.func @transform_1(%arg0: i32) -> (i32, i32) {
    %c0_i32 = arith.constant 0 : i32
    %c0_i32_0 = arith.constant 0 : i32
    %c0_i32_1 = arith.constant 0 : i32
    return %c0_i32, %c0_i32_0 : i32, i32
  }
  func.func @transform_2(%arg0: i32) -> (i32, i32) {
    %c0_i32 = arith.constant 0 : i32
    %c0_i32_0 = arith.constant 0 : i32
    %c0_i32_1 = arith.constant 0 : i32
    return %c0_i32, %c0_i32_0 : i32, i32
  }
  func.func @transform_3(%arg0: i32) -> (i32, i32) {
    %c0_i32 = arith.constant 0 : i32
    %c0_i32_0 = arith.constant 0 : i32
    %c0_i32_1 = arith.constant 0 : i32
    return %c0_i32, %c0_i32_0 : i32, i32
  }
  func.func @transform_4(%arg0: i32) -> (i32, i32) {
    %c0_i32 = arith.constant 0 : i32
    %c0_i32_0 = arith.constant 0 : i32
    %c0_i32_1 = arith.constant 0 : i32
    return %c0_i32, %c0_i32_0 : i32, i32
  }
  func.func @transform_5(%arg0: i32) -> (i32, i32) {
    %c0_i32 = arith.constant 0 : i32
    %c0_i32_0 = arith.constant 0 : i32
    %c0_i32_1 = arith.constant 0 : i32
    return %c0_i32, %c0_i32_0 : i32, i32
  }
  func.func @transform_6(%arg0: i32) -> (i32, i32) {
    %c0_i32 = arith.constant 0 : i32
    %c0_i32_0 = arith.constant 0 : i32
    %c0_i32_1 = arith.constant 0 : i32
    return %c0_i32, %c0_i32_0 : i32, i32
  }
  func.func @transform_7(%arg0: i32) -> (i32, i32) {
    %c0_i32 = arith.constant 0 : i32
    %c0_i32_0 = arith.constant 0 : i32
    return %arg0, %c0_i32 : i32, i32
  }
  func.func @transform_8(%arg0: i32) -> (i32, i32) {
    %c0_i32 = arith.constant 0 : i32
    %c0_i32_0 = arith.constant 0 : i32
    return %arg0, %c0_i32 : i32, i32
  }
}

module attributes {stable_mosaic.version = 11 : i64} {
  func.func @_subject_invariant_kernel(%arg0: i32, %arg1: memref<8x128xbf16, #tpu.memory_space<vmem>>, %arg2: memref<128x384xbf16, #tpu.memory_space<vmem>>, %arg3: memref<1x384xf32, #tpu.memory_space<vmem>>, %arg4: memref<256x128xbf16, #tpu.memory_space<vmem>>, %arg5: memref<1x128xf32, #tpu.memory_space<vmem>>, %arg6: memref<128x128xbf16, #tpu.memory_space<vmem>>, %arg7: memref<1x128xf32, #tpu.memory_space<vmem>>, %arg8: memref<8x128xf32, #tpu.memory_space<vmem>>, %arg9: memref<8x128xf32, #tpu.memory_space<vmem>>) attributes {dimension_semantics = [#tpu.dimension_semantics<parallel>], iteration_bounds = array<i64: 1>, scalar_prefetch = 0 : i64, scratch_operands = 0 : i64, tpu.core_type = #tpu.core_type<tc>, window_params = [{transform_indices = @transform_0, window_bounds = array<i64: 8, 128>}, {pipeline_mode = #tpu.pipeline_mode<synchronous>, transform_indices = @transform_1, window_bounds = array<i64: 128, 384>}, {pipeline_mode = #tpu.pipeline_mode<synchronous>, transform_indices = @transform_2, window_bounds = array<i64: 1, 384>}, {pipeline_mode = #tpu.pipeline_mode<synchronous>, transform_indices = @transform_3, window_bounds = array<i64: 256, 128>}, {pipeline_mode = #tpu.pipeline_mode<synchronous>, transform_indices = @transform_4, window_bounds = array<i64: 1, 128>}, {pipeline_mode = #tpu.pipeline_mode<synchronous>, transform_indices = @transform_5, window_bounds = array<i64: 128, 128>}, {pipeline_mode = #tpu.pipeline_mode<synchronous>, transform_indices = @transform_6, window_bounds = array<i64: 1, 128>}, {transform_indices = @transform_7, window_bounds = array<i64: 8, 128>}, {transform_indices = @transform_8, window_bounds = array<i64: 8, 128>}]} {
    %c0 = arith.constant 0 : index
    %c0_0 = arith.constant 0 : index
    %0 = vector.load %arg1[%c0, %c0_0] : memref<8x128xbf16, #tpu.memory_space<vmem>>, vector<8x128xbf16>
    %c0_1 = arith.constant 0 : index
    %c0_2 = arith.constant 0 : index
    %1 = vector.load %arg2[%c0_1, %c0_2] : memref<128x384xbf16, #tpu.memory_space<vmem>>, vector<128x384xbf16>
    %cst = arith.constant dense<0.000000e+00> : vector<8x384xf32>
    %2 = tpu.matmul %0, %1, %cst {dimension_numbers = #tpu.dot_dimension_numbers<[1], [0], [0], [1], [0, 0, 1, 1], [], []>} : vector<8x128xbf16>, vector<128x384xbf16>, vector<8x384xf32> -> vector<8x384xf32>
    %c0_3 = arith.constant 0 : index
    %c0_4 = arith.constant 0 : index
    %3 = vector.load %arg3[%c0_3, %c0_4] : memref<1x384xf32, #tpu.memory_space<vmem>>, vector<1x384xf32>
    %4 = vector.broadcast %3 : vector<1x384xf32> to vector<8x384xf32>
    %5 = arith.addf %2, %4 : vector<8x384xf32>
    %cst_5 = arith.constant 0.000000e+00 : f32
    %6 = vector.broadcast %cst_5 : f32 to vector<8x384xf32>
    %7 = arith.maximumf %5, %6 : vector<8x384xf32>
    %8 = arith.truncf %7 : vector<8x384xf32> to vector<8x384xbf16>
    %9 = vector.extract_strided_slice %8 {offsets = [0, 0], sizes = [8, 256], strides = [1, 1]} : vector<8x384xbf16> to vector<8x256xbf16>
    %10 = vector.extract_strided_slice %8 {offsets = [0, 256], sizes = [8, 128], strides = [1, 1]} : vector<8x384xbf16> to vector<8x128xbf16>
    %c0_6 = arith.constant 0 : index
    %c0_7 = arith.constant 0 : index
    %11 = vector.load %arg4[%c0_6, %c0_7] : memref<256x128xbf16, #tpu.memory_space<vmem>>, vector<256x128xbf16>
    %cst_8 = arith.constant dense<0.000000e+00> : vector<8x128xf32>
    %12 = tpu.matmul %9, %11, %cst_8 {dimension_numbers = #tpu.dot_dimension_numbers<[1], [0], [0], [1], [0, 0, 1, 1], [], []>} : vector<8x256xbf16>, vector<256x128xbf16>, vector<8x128xf32> -> vector<8x128xf32>
    %c0_9 = arith.constant 0 : index
    %c0_10 = arith.constant 0 : index
    %13 = vector.load %arg5[%c0_9, %c0_10] : memref<1x128xf32, #tpu.memory_space<vmem>>, vector<1x128xf32>
    %14 = vector.broadcast %13 : vector<1x128xf32> to vector<8x128xf32>
    %15 = arith.addf %12, %14 : vector<8x128xf32>
    %c0_11 = arith.constant 0 : index
    %c0_12 = arith.constant 0 : index
    %16 = vector.load %arg8[%c0_11, %c0_12] : memref<8x128xf32, #tpu.memory_space<vmem>>, vector<8x128xf32>
    tpu.vector_store %arg8[%c0_11, %c0_12], %15 {strides = array<i32>} : memref<8x128xf32, #tpu.memory_space<vmem>>, vector<8x128xf32>,
    %c0_13 = arith.constant 0 : index
    %c0_14 = arith.constant 0 : index
    %17 = vector.load %arg6[%c0_13, %c0_14] : memref<128x128xbf16, #tpu.memory_space<vmem>>, vector<128x128xbf16>
    %cst_15 = arith.constant dense<0.000000e+00> : vector<8x128xf32>
    %18 = tpu.matmul %10, %17, %cst_15 {dimension_numbers = #tpu.dot_dimension_numbers<[1], [0], [0], [1], [0, 0, 1, 1], [], []>} : vector<8x128xbf16>, vector<128x128xbf16>, vector<8x128xf32> -> vector<8x128xf32>
    %c0_16 = arith.constant 0 : index
    %c0_17 = arith.constant 0 : index
    %19 = vector.load %arg7[%c0_16, %c0_17] : memref<1x128xf32, #tpu.memory_space<vmem>>, vector<1x128xf32>
    %20 = vector.broadcast %19 : vector<1x128xf32> to vector<8x128xf32>
    %21 = arith.addf %18, %20 : vector<8x128xf32>
    %c0_18 = arith.constant 0 : index
    %c0_19 = arith.constant 0 : index
    %22 = vector.load %arg9[%c0_18, %c0_19] : memref<8x128xf32, #tpu.memory_space<vmem>>, vector<8x128xf32>
    tpu.vector_store %arg9[%c0_18, %c0_19], %21 {strides = array<i32>} : memref<8x128xf32, #tpu.memory_space<vmem>>, vector<8x128xf32>,
    return
  }
  func.func @transform_0(%arg0: i32) -> (i32, i32) {
    %c0_i32 = arith.constant 0 : i32
    %c0_i32_0 = arith.constant 0 : i32
    return %arg0, %c0_i32 : i32, i32
  }
  func.func @transform_1(%arg0: i32) -> (i32, i32) {
    %c0_i32 = arith.constant 0 : i32
    %c0_i32_0 = arith.constant 0 : i32
    %c0_i32_1 = arith.constant 0 : i32
    return %c0_i32, %c0_i32_0 : i32, i32
  }
  func.func @transform_2(%arg0: i32) -> (i32, i32) {
    %c0_i32 = arith.constant 0 : i32
    %c0_i32_0 = arith.constant 0 : i32
    %c0_i32_1 = arith.constant 0 : i32
    return %c0_i32, %c0_i32_0 : i32, i32
  }
  func.func @transform_3(%arg0: i32) -> (i32, i32) {
    %c0_i32 = arith.constant 0 : i32
    %c0_i32_0 = arith.constant 0 : i32
    %c0_i32_1 = arith.constant 0 : i32
    return %c0_i32, %c0_i32_0 : i32, i32
  }
  func.func @transform_4(%arg0: i32) -> (i32, i32) {
    %c0_i32 = arith.constant 0 : i32
    %c0_i32_0 = arith.constant 0 : i32
    %c0_i32_1 = arith.constant 0 : i32
    return %c0_i32, %c0_i32_0 : i32, i32
  }
  func.func @transform_5(%arg0: i32) -> (i32, i32) {
    %c0_i32 = arith.constant 0 : i32
    %c0_i32_0 = arith.constant 0 : i32
    %c0_i32_1 = arith.constant 0 : i32
    return %c0_i32, %c0_i32_0 : i32, i32
  }
  func.func @transform_6(%arg0: i32) -> (i32, i32) {
    %c0_i32 = arith.constant 0 : i32
    %c0_i32_0 = arith.constant 0 : i32
    %c0_i32_1 = arith.constant 0 : i32
    return %c0_i32, %c0_i32_0 : i32, i32
  }
  func.func @transform_7(%arg0: i32) -> (i32, i32) {
    %c0_i32 = arith.constant 0 : i32
    %c0_i32_0 = arith.constant 0 : i32
    return %arg0, %c0_i32 : i32, i32
  }
  func.func @transform_8(%arg0: i32) -> (i32, i32) {
    %c0_i32 = arith.constant 0 : i32
    %c0_i32_0 = arith.constant 0 : i32
    return %arg0, %c0_i32 : i32, i32
  }
}

</mosaic_0001>

<bundles_post_ra>
// kernel: tpu_custom_call.1
= control target key start
LH: loop header
LB: loop body
LE: loop exit
PB: predicated region body
PF: predicated region fallthrough
CT: control target
= control target key end

     0   :  { %14 = vsyncpa [#allocation3], 0  ;;  %s1114_s0 = inlined_call_operand.hbm [shape: bf16[8,128], index: 0, kind: input, shape index: {}]   ;;  %s1115_s1 = inlined_call_operand.hbm [shape: bf16[128,384], index: 1, kind: input, shape index: {}]   ;;  %s1116_s2 = inlined_call_operand.hbm [shape: f32[1,384], index: 2, kind: input, shape index: {}]   ;;  %s1117_s3 = inlined_call_operand.hbm [shape: bf16[256,128], index: 3, kind: input, shape index: {}]   ;;  %s1118_s4 = inlined_call_operand.vmem [shape: f32[1,128], index: 4, kind: input, shape index: {}]   ;;  %s1119_s5 = inlined_call_operand.hbm [shape: bf16[128,128], index: 5, kind: input, shape index: {}]   ;;  %s1120_s6 = inlined_call_operand.vmem [shape: f32[1,128], index: 6, kind: input, shape index: {}]   ;;  %s1121_s7 = inlined_call_operand.hbm [shape: f32[8,128], index: 7, kind: output, shape index: {0}]   ;;  %s1122_s8 = inlined_call_operand.hbm [shape: f32[8,128], index: 8, kind: output, shape index: {1}]  }
   0x1   :  { %15 = vsyncpa [#allocation6], 0 }
   0x2   :  { %16 = vsyncpa [#allocation9], 0 }
   0x3   :  { %17 = vsyncpa [#allocation4], 0  ;;  %s34_s29 = sshll.u32 %s1115_s1, 4  ;;  %s35_s29 = int_to_ptr.hbm [resolvable:$true] %s34_s29 }
   0x4   :  { %18 = vsyncpa [#allocation13], 0  ;;  %s1031_s30 = smov [#allocation5]   ;;  %s58_s12 = sshll.u32 %s1117_s3, 4  ;;  %s59_s12 = int_to_ptr.hbm [resolvable:$true] %s58_s12 }
   0x5   :  { %s36_s9 = sshll.u32 %s1031_s30, 4  ;;  %s1032_s13 = smov 192   ;;  %s37_s9 = int_to_ptr.vmem [resolvable:$true] %s36_s9 }
   0x6   :  { %s1033_s14 = smov 12   ;;  %s1034_s15 = smov [#allocation8]  }
   0x7   :  { %42 = dma.hbm_to_vmem [thread:$0]  %s35_s29, 3072, %s37_s9, [#allocation6], %s1032_s13, %s1032_s13, %s1033_s14  }
   0x8   :  { %s60_s16 = sshll.u32 %s1034_s15, 4  ;;  %s1035_s17 = smov 64   ;;  %s61_s16 = int_to_ptr.vmem [resolvable:$true] %s60_s16 }
   0x9   :  { %s1036_s18 = smov 4   ;;  %s24_s20 = sshll.u32 %s1114_s0, 4  ;;  %s25_s20 = int_to_ptr.hbm [resolvable:$true] %s24_s20 }
   0xa   :  { %66 = dma.hbm_to_vmem [thread:$0]  %s59_s12, 2048, %s61_s16, [#allocation9], %s1035_s17, %s1035_s17, %s1036_s18  }
   0xb   :  { %s1037_s21 = smov [#allocation2]   ;;  %s48_s24 = sshll.u32 %s1116_s2, 4  ;;  %s49_s24 = int_to_ptr.hbm [resolvable:$true] %s48_s24 }
   0xc   :  { %s26_s22 = sshll.u32 %s1037_s21, 4  ;;  %s1038_s25 = smov [#allocation7]   ;;  %s27_s22 = int_to_ptr.vmem [resolvable:$true] %s26_s22 }
   0xd   :  { %29 = dma.hbm_to_vmem [thread:$0]  %s25_s20, 64, %s27_s22, [#allocation3]  }
   0xe   :  { %s50_s26 = sshll.u32 %s1038_s25, 4  ;;  %s73_s29 = sshll.u32 %s1119_s5, 4  ;;  %s51_s26 = int_to_ptr.vmem [resolvable:$true] %s50_s26  ;;  %s74_s29 = int_to_ptr.hbm [resolvable:$true] %s73_s29 }
   0xf   :  { %53 = dma.hbm_to_vmem [thread:$0]  %s49_s24, 48, %s51_s26, [#allocation6]  }
  0x10   :  { %s1039_s0 = smov [#allocation10]  }
  0x11   :  { %s75_s30 = sshll.u32 %s1039_s0, 4  ;;  %s76_s30 = int_to_ptr.vmem [resolvable:$true] %s75_s30 }
  0x12   :  { %81 = dma.hbm_to_vmem [thread:$0]  %s74_s29, 1024, %s76_s30, [#allocation9], %s1035_s17, %s1035_s17, %s1036_s18  }
  0x13   :  { %1021 = dma.done.wait [#allocation3], 64  }
  0x14   :  { %1022 = vsyncadd [#allocation3], 4294967232 }
  0x15   :  { %1023 = dma.done.wait [#allocation6], 3120  }
  0x16   :  { %1024 = vsyncadd [#allocation6], 4294964176 }
  0x17   :  { %1025 = dma.done.wait [#allocation9], 3072  }
  0x18   :  { %1026 = vsyncadd [#allocation9], 4294964224  ;;  %v686_v0 = vld [vmem:[#allocation5 + $0xa8] sm:$0xf]  ;;  %v814_v1 = vld [vmem:[#allocation5 + $0xb0] sm:$0xf0] }
  0x19   :  { %v813_v2 = vld [vmem:[#allocation5 + $0xac] sm:$0xf]  ;;  %v687_v3 = vor.u32 %v814_v1, %v686_v0  ;;  %v688_v4 = vld [vmem:[#allocation5 + $0xb4] sm:$0xf0]  ;;  %v694_v5 = vld [vmem:[#allocation5 + $0xb0] sm:$0xf] }
  0x1a   :  { %v815_v6 = vld [vmem:[#allocation5 + $0xb8] sm:$0xf0]  ;;  %v691_v7 = vor.u32 %v813_v2, %v688_v4  ;;  %v674_v9 = vld [vmem:[#allocation5 + $0x90] sm:$0xf]  ;;  %v810_v11 = vld [vmem:[#allocation5 + $0x94] sm:$0xf] }
  0x1b   :  { %v695_v8 = vor.u32 %v815_v6, %v694_v5  ;;  %v811_v10 = vld [vmem:[#allocation5 + $0x98] sm:$0xf0]  ;;  %273 = vmatpush.bf16.msra.mxu0 %v687_v3  ;;  %v676_v13 = vld [vmem:[#allocation5 + $0x9c] sm:$0xf0]  ;;  %v682_v14 = vld [vmem:[#allocation5 + $0x98] sm:$0xf] }
  0x1c   :  { %v675_v12 = vor.u32 %v811_v10, %v674_v9  ;;  %v812_v15 = vld [vmem:[#allocation5 + $0xa0] sm:$0xf0]  ;;  %286 = vmatpush.bf16.msra.mxu1 %v691_v7  ;;  %v679_v16 = vor.u32 %v810_v11, %v676_v13  ;;  %v662_v18 = vld [vmem:[#allocation5 + $0x78] sm:$0xf]  ;;  %v807_v20 = vld [vmem:[#allocation5 + $0x7c] sm:$0xf] }
  0x1d   :  { %299 = vmatpush.bf16.msra.mxu2 %v695_v8  ;;  %v683_v17 = vor.u32 %v812_v15, %v682_v14  ;;  %v808_v19 = vld [vmem:[#allocation5 + $0x80] sm:$0xf0]  ;;  %v664_v21 = vld [vmem:[#allocation5 + $0x84] sm:$0xf0]  ;;  %v670_v22 = vld [vmem:[#allocation5 + $0x80] sm:$0xf] }
  0x1e   :  { %v809_v23 = vld [vmem:[#allocation5 + $0x88] sm:$0xf0]  ;;  %v663_v24 = vor.u32 %v808_v19, %v662_v18  ;;  %v667_v25 = vor.u32 %v807_v20, %v664_v21  ;;  %v650_v27 = vld [vmem:[#allocation5 + $0x60] sm:$0xf]  ;;  %v804_v29 = vld [vmem:[#allocation5 + $0x64] sm:$0xf] }
  0x1f   :  { %274 = vmatpush.bf16.msra.mxu0 %v675_v12  ;;  %v671_v26 = vor.u32 %v809_v23, %v670_v22  ;;  %v805_v28 = vld [vmem:[#allocation5 + $0x68] sm:$0xf0]  ;;  %v652_v30 = vld [vmem:[#allocation5 + $0x6c] sm:$0xf0]  ;;  %v658_v31 = vld [vmem:[#allocation5 + $0x68] sm:$0xf] }
  0x20   :  { %287 = vmatpush.bf16.msra.mxu1 %v679_v16  ;;  %v806_v32 = vld [vmem:[#allocation5 + $0x70] sm:$0xf0]  ;;  %v651_v33 = vor.u32 %v805_v28, %v650_v27  ;;  %v655_v34 = vor.u32 %v804_v29, %v652_v30  ;;  %v638_v36 = vld [vmem:[#allocation5 + $0x48] sm:$0xf]  ;;  %v801_v38 = vld [vmem:[#allocation5 + $0x4c] sm:$0xf] }
  0x21   :  { %300 = vmatpush.bf16.msra.mxu2 %v683_v17  ;;  %v659_v35 = vor.u32 %v806_v32, %v658_v31  ;;  %v802_v37 = vld [vmem:[#allocation5 + $0x50] sm:$0xf0]  ;;  %v640_v39 = vld [vmem:[#allocation5 + $0x54] sm:$0xf0]  ;;  %v646_v40 = vld [vmem:[#allocation5 + $0x50] sm:$0xf] }
  0x22   :  { %v803_v41 = vld [vmem:[#allocation5 + $0x58] sm:$0xf0]  ;;  %v639_v42 = vor.u32 %v802_v37, %v638_v36  ;;  %v626_v43 = vld [vmem:[#allocation5 + $0x30] sm:$0xf]  ;;  %v643_v44 = vor.u32 %v801_v38, %v640_v39  ;;  %v798_v47 = vld [vmem:[#allocation5 + $0x34] sm:$0xf] }
  0x23   :  { %275 = vmatpush.bf16.msra.mxu0 %v663_v24  ;;  %v647_v45 = vor.u32 %v803_v41, %v646_v40  ;;  %v799_v46 = vld [vmem:[#allocation5 + $0x38] sm:$0xf0]  ;;  %v628_v49 = vld [vmem:[#allocation5 + $0x3c] sm:$0xf0]  ;;  %v634_v50 = vld [vmem:[#allocation5 + $0x38] sm:$0xf] }
  0x24   :  { %288 = vmatpush.bf16.msra.mxu1 %v667_v25  ;;  %v823_v48 = vld [vmem:[#allocation8 + $0x38] sm:$0xff]  ;;  %v800_v51 = vld [vmem:[#allocation5 + $0x40] sm:$0xf0]  ;;  %v822_v52 = vld [vmem:[#allocation8 + $0x30] sm:$0xff]  ;;  %v627_v53 = vor.u32 %v799_v46, %v626_v43  ;;  %v631_v55 = vor.u32 %v798_v47, %v628_v49  ;;  %s1040_s9 = smov [#allocation12]   ;;  %s583_s13 = sshll.u32 %s1122_s8, 4  ;;  %s584_s13 = int_to_ptr.hbm [resolvable:$true] %s583_s13 }
  0x25   :  { %301 = vmatpush.bf16.msra.mxu2 %v671_v26  ;;  %456 = vmatpush.bf16.msra.mxu3 %v823_v48  ;;  %v614_v54 = vld [vmem:[#allocation5 + $0x18] sm:$0xf]  ;;  %v635_v56 = vor.u32 %v800_v51, %v634_v50  ;;  %v796_v57 = vld [vmem:[#allocation5 + $0x20] sm:$0xf0]  ;;  %v795_v58 = vld [vmem:[#allocation5 + $0x1c] sm:$0xf] }
  0x26   :  { %v616_v59 = vld [vmem:[#allocation5 + $0x24] sm:$0xf0]  ;;  %v622_v60 = vld [vmem:[#allocation5 + $0x20] sm:$0xf]  ;;  %v797_v61 = vld [vmem:[#allocation5 + $0x28] sm:$0xf0]  ;;  %v615_v63 = vor.u32 %v796_v57, %v614_v54 }
  0x27   :  { %276 = vmatpush.bf16.msra.mxu0 %v651_v33  ;;  %v821_v62 = vld [vmem:[#allocation8 + $0x28] sm:$0xff]  ;;  %v619_v0 = vor.u32 %v795_v58, %v616_v59  ;;  %v623_v1 = vor.u32 %v797_v61, %v622_v60  ;;  %v602_v2 = vld [vmem:[#allocation5] sm:$0xf]  ;;  %v792_v4 = vld [vmem:[#allocation5 + $0x4] sm:$0xf]  ;;  %s581_s10 = sshll.u32 %s1040_s9, 4  ;;  %s582_s10 = int_to_ptr.vmem [resolvable:$true] %s581_s10 }
  0x28   :  { %289 = vmatpush.bf16.msra.mxu1 %v655_v34  ;;  %v793_v3 = vld [vmem:[#allocation5 + $0x8] sm:$0xf0]  ;;  %v604_v5 = vld [vmem:[#allocation5 + $0xc] sm:$0xf0]  ;;  %v610_v6 = vld [vmem:[#allocation5 + $0x8] sm:$0xf] }
  0x29   :  { %302 = vmatpush.bf16.msra.mxu2 %v659_v35  ;;  %457 = vmatpush.bf16.msra.mxu3 %v822_v52  ;;  %v794_v7 = vld [vmem:[#allocation5 + $0x10] sm:$0xf0]  ;;  %v820_v8 = vld [vmem:[#allocation8 + $0x20] sm:$0xff]  ;;  %v603_v9 = vor.u32 %v793_v3, %v602_v2  ;;  %v607_v10 = vor.u32 %v792_v4, %v604_v5  ;;  %v831_v12 = vld [vmem:[#allocation8 + $0x78] sm:$0xff]  ;;  %s1041_s16 = smov [#allocation11]   ;;  %s572_s1 = sshll.u32 %s1121_s7, 4  ;;  %s573_s1 = int_to_ptr.hbm [resolvable:$true] %s572_s1 }
  0x2a   :  { %v611_v11 = vor.u32 %v794_v7, %v610_v6  ;;  %v839_v13 = vld [vmem:[#allocation10 + $0x38] sm:$0xff]  ;;  %v830_v16 = vld [vmem:[#allocation8 + $0x70] sm:$0xff]  ;;  %v829_v18 = vld [vmem:[#allocation8 + $0x68] sm:$0xff]  ;;  %s570_s17 = sshll.u32 %s1041_s16, 4  ;;  %s571_s17 = int_to_ptr.vmem [resolvable:$true] %s570_s17 }
  0x2b   :  { %277 = vmatpush.bf16.msra.mxu0 %v639_v42  ;;  %v819_v14 = vld [vmem:[#allocation8 + $0x18] sm:$0xff]  ;;  %v838_v17 = vld [vmem:[#allocation10 + $0x30] sm:$0xff]  ;;  %v837_v19 = vld [vmem:[#allocation10 + $0x28] sm:$0xff] }
  0x2c   :  { %290 = vmatpush.bf16.msra.mxu1 %v643_v44  ;;  %v104_v15 = vld [vmem:[#allocation2] sm:$0xf]  ;;  %v828_v20 = vld [vmem:[#allocation8 + $0x60] sm:$0xff]  ;;  %v818_v24 = vld [vmem:[#allocation8 + $0x10] sm:$0xff] }
  0x2d   :  { %303 = vmatpush.bf16.msra.mxu2 %v647_v45  ;;  %458 = vmatpush.bf16.msra.mxu3 %v821_v62  ;;  %v836_v21 = vld [vmem:[#allocation10 + $0x20] sm:$0xff]  ;;  %v827_v22 = vld [vmem:[#allocation8 + $0x58] sm:$0xff]  ;;  %v826_v25 = vld [vmem:[#allocation8 + $0x50] sm:$0xff] }
  0x2e   :  { %v835_v23 = vld [vmem:[#allocation10 + $0x18] sm:$0xff]  ;;  %v834_v26 = vld [vmem:[#allocation10 + $0x10] sm:$0xff]  ;;  %v817_v27 = vld [vmem:[#allocation8 + $0x8] sm:$0xff] }
  0x2f   :  { %278 = vmatpush.bf16.msra.mxu0 %v627_v53  ;;  %v825_v28 = vld [vmem:[#allocation8 + $0x48] sm:$0xff]  ;;  %v816_v30 = vld [vmem:[#allocation8] sm:$0xff]  ;;  %v137_v33 = vld [vmem:[#allocation7] sm:$0x7] }
  0x30   :  { %291 = vmatpush.bf16.msra.mxu1 %v631_v55  ;;  %v833_v29 = vld [vmem:[#allocation10 + $0x8] sm:$0xff]  ;;  %v824_v31 = vld [vmem:[#allocation8 + $0x40] sm:$0xff]  ;;  %v139_v34 = vperm.slane %v137_v33, 0  ;;  %v140_v35 = vperm.slane %v137_v33, 1  ;;  %v141_v42 = vperm.slane %v137_v33, 2 }
  0x31   :  { %304 = vmatpush.bf16.msra.mxu2 %v635_v56  ;;  %459 = vmatpush.bf16.msra.mxu3 %v820_v8  ;;  %v832_v32 = vld [vmem:[#allocation10] sm:$0xff]  ;;  %v851_v55 = vld [vmem:[%s1120_s6] ss:$0 sm:$0xff] }
  0x32   :  { %v852_v59 = vld [vmem:[%s1118_s4] ss:$0 sm:$0xff] }
  0x33   :  { %279 = vmatpush.bf16.msra.mxu0 %v615_v63 }
  0x34   :  { %292 = vmatpush.bf16.msra.mxu1 %v619_v0 }
  0x35   :  { %305 = vmatpush.bf16.msra.mxu2 %v623_v1  ;;  %460 = vmatpush.bf16.msra.mxu3 %v819_v14 }
  0x37   :  { %280 = vmatpush.bf16.msra.mxu0 %v603_v9 }
  0x38   :  { %293 = vmatpush.bf16.msra.mxu1 %v607_v10 }
  0x39   :  { %306 = vmatpush.bf16.msra.mxu2 %v611_v11  ;;  %461 = vmatpush.bf16.msra.mxu3 %v818_v24 }
  0x3a   :  { %281 = vmatmul.bf16.vlgmr.msra.gmra.mxu0 %v104_v15 }
  0x3b   :  { %469 = vmatpush.bf16.msrb.mxu0 %v831_v12  ;;  %294 = vmatmul.bf16.vlgmr.msra.gmra.mxu1 %v104_v15 }
  0x3c   :  { %551 = vmatpush.bf16.msrb.mxu1 %v839_v13  ;;  %307 = vmatmul.bf16.vlgmr.msra.gmra.mxu2 %v104_v15 }
  0x3d   :  { %462 = vmatpush.bf16.msra.mxu3 %v817_v27 }
  0x3f   :  { %470 = vmatpush.bf16.msrb.mxu0 %v830_v16 }
  0x40   :  { %552 = vmatpush.bf16.msrb.mxu1 %v838_v17 }
  0x41   :  { %463 = vmatpush.bf16.msra.mxu3 %v816_v30 }
  0x43   :  { %471 = vmatpush.bf16.msrb.mxu0 %v829_v18 }
  0x44   :  { %553 = vmatpush.bf16.msrb.mxu1 %v837_v19 }
  0x47   :  { %472 = vmatpush.bf16.msrb.mxu0 %v828_v20 }
  0x48   :  { %554 = vmatpush.bf16.msrb.mxu1 %v836_v21 }
  0x4b   :  { %473 = vmatpush.bf16.msrb.mxu0 %v827_v22 }
  0x4c   :  { %555 = vmatpush.bf16.msrb.mxu1 %v835_v23 }
  0x4f   :  { %474 = vmatpush.bf16.msrb.mxu0 %v826_v25 }
  0x50   :  { %556 = vmatpush.bf16.msrb.mxu1 %v834_v26 }
  0x53   :  { %475 = vmatpush.bf16.msrb.mxu0 %v825_v28 }
  0x54   :  { %557 = vmatpush.bf16.msrb.mxu1 %v833_v29 }
  0x57   :  { %476 = vmatpush.bf16.msrb.mxu0 %v824_v31 }
  0x58   :  { %558 = vmatpush.bf16.msrb.mxu1 %v832_v32 }
  0xb7   :  { %v282_v36 = vpop.f32.mrf.mxu0 }
  0xb8   :  { %v283_v37 = vadd.f32 %v282_v36, %v139_v34  ;;  %v295_v38 = vpop.f32.mrf.mxu1 }
  0xb9   :  { %v296_v39 = vadd.f32 %v295_v38, %v140_v35 }
  0xba   :  { %v312_v40 = vmax.f32 %v283_v37, 0.0 }
  0xbb   :  { %v313_v41 = vmax.f32 %v296_v39, 0.0 }
  0xbd   :  { %v315_v43 = vpack.c.bf16 %v313_v41, %v312_v40 }
  0xbf   :  { %v308_v44 = vpop.f32.mrf.mxu2  ;;  %v284_v46 = vpop.f32.mrf.mxu0  ;;  %v354_v47 = vunpack.c.l.b16 %v315_v43  ;;  %v355_v48 = vunpack.c.h.b16 %v315_v43 }
  0xc0   :  { %v309_v45 = vadd.f32 %v308_v44, %v141_v42  ;;  %v297_v49 = vpop.f32.mrf.mxu1 }
  0xc1   :  { %v356_v51 = vpack.c.b16 %v354_v47, %v354_v47  ;;  %v357_v52 = vpack.c.b16 %v355_v48, %v355_v48 }
  0xc2   :  { %v314_v50 = vmax.f32 %v309_v45, 0.0 }
  0xc3   :  { %464 = vmatmul.bf16.vlgmr.msra.gmra.mxu3 %v356_v51  ;;  %477 = vmatmul.bf16.vlgmr.msrb.gmra.mxu0 %v357_v52 }
  0xc4   :  { %v316_v53 = vpack.c.bf16 %v314_v50, %v314_v50 }
  0xc6   :  { %559 = vmatmul.bf16.vlgmr.msrb.gmra.mxu1 %v316_v53 }
  0xc7   :  { %v310_v54 = vpop.f32.mrf.mxu2 }
 0x140   :  { %v478_v56 = vpop.f32.mrf.mxu0 }
 0x143   :  { %v560_v57 = vpop.f32.mrf.mxu1 }
 0x144   :  { %v561_v58 = vadd.f32 %v851_v55, %v560_v57 }
 0x146   :  { %564 = vst [vmem:[#allocation12] sm:$0xff] %v561_v58  ;;  %v465_v60 = vpop.f32.mrf.mxu3 }
 0x147   :  { %586 = dma.vmem_to_hbm [thread:$0]  %s582_s10, 128, %s584_s13, [#allocation13]   ;;  %v466_v61 = vadd.f32 %v852_v59, %v465_v60 }
 0x148   :  { %v480_v62 = vpop.f32.mrf.mxu0 }
 0x149   :  { %v479_v63 = vadd.f32 %v478_v56, %v466_v61 }
 0x14b   :  { %v562_v0 = vpop.f32.mrf.mxu1  ;;  %482 = vst [vmem:[#allocation11] sm:$0xff] %v479_v63 }
 0x14c   :  { %575 = dma.vmem_to_hbm [thread:$0]  %s571_s17, 128, %s573_s1, [#allocation4]  }
 0x14e   :  { %v467_v1 = vpop.f32.mrf.mxu3 }
 0x14f   :  { %1027 = dma.done.wait [#allocation4], 128  }
 0x150   :  { %1028 = vsyncadd [#allocation4], 4294967168 }
 0x151   :  { %1029 = dma.done.wait [#allocation13], 128  }
 0x152   :  { %1030 = vsyncadd [#allocation13], 4294967168 }
 0x153   :  { %595 = vsyncpa [#allocation3], 1 }
 0x154   :  { %596 = vsyncpa [#allocation6], 1 }
 0x155   :  { %597 = vsyncpa [#allocation9], 1 }
 0x156   :  { %598 = vsyncpa [#allocation4], 1 }
 0x157   :  { %599 = vsyncpa [#allocation13], 1 }

// kernel: tpu_custom_call.1
= control target key start
LH: loop header
LB: loop body
LE: loop exit
PB: predicated region body
PF: predicated region fallthrough
CT: control target
= control target key end

     0   :  { %14 = vsyncpa [#allocation3], 0  ;;  %s1114_s0 = inlined_call_operand.hbm [shape: bf16[8,128], index: 0, kind: input, shape index: {}]   ;;  %s1115_s1 = inlined_call_operand.hbm [shape: bf16[128,384], index: 1, kind: input, shape index: {}]   ;;  %s1116_s2 = inlined_call_operand.hbm [shape: f32[1,384], index: 2, kind: input, shape index: {}]   ;;  %s1117_s3 = inlined_call_operand.hbm [shape: bf16[256,128], index: 3, kind: input, shape index: {}]   ;;  %s1118_s4 = inlined_call_operand.vmem [shape: f32[1,128], index: 4, kind: input, shape index: {}]   ;;  %s1119_s5 = inlined_call_operand.hbm [shape: bf16[128,128], index: 5, kind: input, shape index: {}]   ;;  %s1120_s6 = inlined_call_operand.vmem [shape: f32[1,128], index: 6, kind: input, shape index: {}]   ;;  %s1121_s7 = inlined_call_operand.hbm [shape: f32[8,128], index: 7, kind: output, shape index: {0}]   ;;  %s1122_s8 = inlined_call_operand.hbm [shape: f32[8,128], index: 8, kind: output, shape index: {1}]  }
   0x1   :  { %15 = vsyncpa [#allocation6], 0 }
   0x2   :  { %16 = vsyncpa [#allocation9], 0 }
   0x3   :  { %17 = vsyncpa [#allocation4], 0  ;;  %s34_s29 = sshll.u32 %s1115_s1, 4  ;;  %s35_s29 = int_to_ptr.hbm [resolvable:$true] %s34_s29 }
   0x4   :  { %18 = vsyncpa [#allocation13], 0  ;;  %s1031_s30 = smov [#allocation5]   ;;  %s58_s12 = sshll.u32 %s1117_s3, 4  ;;  %s59_s12 = int_to_ptr.hbm [resolvable:$true] %s58_s12 }
   0x5   :  { %s36_s9 = sshll.u32 %s1031_s30, 4  ;;  %s1032_s13 = smov 192   ;;  %s37_s9 = int_to_ptr.vmem [resolvable:$true] %s36_s9 }
   0x6   :  { %s1033_s14 = smov 12   ;;  %s1034_s15 = smov [#allocation8]  }
   0x7   :  { %42 = dma.hbm_to_vmem [thread:$0]  %s35_s29, 3072, %s37_s9, [#allocation6], %s1032_s13, %s1032_s13, %s1033_s14  }
   0x8   :  { %s60_s16 = sshll.u32 %s1034_s15, 4  ;;  %s1035_s17 = smov 64   ;;  %s61_s16 = int_to_ptr.vmem [resolvable:$true] %s60_s16 }
   0x9   :  { %s1036_s18 = smov 4   ;;  %s24_s20 = sshll.u32 %s1114_s0, 4  ;;  %s25_s20 = int_to_ptr.hbm [resolvable:$true] %s24_s20 }
   0xa   :  { %66 = dma.hbm_to_vmem [thread:$0]  %s59_s12, 2048, %s61_s16, [#allocation9], %s1035_s17, %s1035_s17, %s1036_s18  }
   0xb   :  { %s1037_s21 = smov [#allocation2]   ;;  %s48_s24 = sshll.u32 %s1116_s2, 4  ;;  %s49_s24 = int_to_ptr.hbm [resolvable:$true] %s48_s24 }
   0xc   :  { %s26_s22 = sshll.u32 %s1037_s21, 4  ;;  %s1038_s25 = smov [#allocation7]   ;;  %s27_s22 = int_to_ptr.vmem [resolvable:$true] %s26_s22 }
   0xd   :  { %29 = dma.hbm_to_vmem [thread:$0]  %s25_s20, 64, %s27_s22, [#allocation3]  }
   0xe   :  { %s50_s26 = sshll.u32 %s1038_s25, 4  ;;  %s73_s29 = sshll.u32 %s1119_s5, 4  ;;  %s51_s26 = int_to_ptr.vmem [resolvable:$true] %s50_s26  ;;  %s74_s29 = int_to_ptr.hbm [resolvable:$true] %s73_s29 }
   0xf   :  { %53 = dma.hbm_to_vmem [thread:$0]  %s49_s24, 48, %s51_s26, [#allocation6]  }
  0x10   :  { %s1039_s0 = smov [#allocation10]  }
  0x11   :  { %s75_s30 = sshll.u32 %s1039_s0, 4  ;;  %s76_s30 = int_to_ptr.vmem [resolvable:$true] %s75_s30 }
  0x12   :  { %81 = dma.hbm_to_vmem [thread:$0]  %s74_s29, 1024, %s76_s30, [#allocation9], %s1035_s17, %s1035_s17, %s1036_s18  }
  0x13   :  { %1021 = dma.done.wait [#allocation3], 64  }
  0x14   :  { %1022 = vsyncadd [#allocation3], 4294967232 }
  0x15   :  { %1023 = dma.done.wait [#allocation6], 3120  }
  0x16   :  { %1024 = vsyncadd [#allocation6], 4294964176 }
  0x17   :  { %1025 = dma.done.wait [#allocation9], 3072  }
  0x18   :  { %1026 = vsyncadd [#allocation9], 4294964224  ;;  %v686_v0 = vld [vmem:[#allocation5 + $0xa8] sm:$0xf]  ;;  %v814_v1 = vld [vmem:[#allocation5 + $0xb0] sm:$0xf0] }
  0x19   :  { %v813_v2 = vld [vmem:[#allocation5 + $0xac] sm:$0xf]  ;;  %v687_v3 = vor.u32 %v814_v1, %v686_v0  ;;  %v688_v4 = vld [vmem:[#allocation5 + $0xb4] sm:$0xf0]  ;;  %v694_v5 = vld [vmem:[#allocation5 + $0xb0] sm:$0xf] }
  0x1a   :  { %v815_v6 = vld [vmem:[#allocation5 + $0xb8] sm:$0xf0]  ;;  %v691_v7 = vor.u32 %v813_v2, %v688_v4  ;;  %v674_v9 = vld [vmem:[#allocation5 + $0x90] sm:$0xf]  ;;  %v810_v11 = vld [vmem:[#allocation5 + $0x94] sm:$0xf] }
  0x1b   :  { %v695_v8 = vor.u32 %v815_v6, %v694_v5  ;;  %v811_v10 = vld [vmem:[#allocation5 + $0x98] sm:$0xf0]  ;;  %273 = vmatpush.bf16.msra.mxu0 %v687_v3  ;;  %v676_v13 = vld [vmem:[#allocation5 + $0x9c] sm:$0xf0]  ;;  %v682_v14 = vld [vmem:[#allocation5 + $0x98] sm:$0xf] }
  0x1c   :  { %v675_v12 = vor.u32 %v811_v10, %v674_v9  ;;  %v812_v15 = vld [vmem:[#allocation5 + $0xa0] sm:$0xf0]  ;;  %286 = vmatpush.bf16.msra.mxu1 %v691_v7  ;;  %v679_v16 = vor.u32 %v810_v11, %v676_v13  ;;  %v662_v18 = vld [vmem:[#allocation5 + $0x78] sm:$0xf]  ;;  %v807_v20 = vld [vmem:[#allocation5 + $0x7c] sm:$0xf] }
  0x1d   :  { %299 = vmatpush.bf16.msra.mxu2 %v695_v8  ;;  %v683_v17 = vor.u32 %v812_v15, %v682_v14  ;;  %v808_v19 = vld [vmem:[#allocation5 + $0x80] sm:$0xf0]  ;;  %v664_v21 = vld [vmem:[#allocation5 + $0x84] sm:$0xf0]  ;;  %v670_v22 = vld [vmem:[#allocation5 + $0x80] sm:$0xf] }
  0x1e   :  { %v809_v23 = vld [vmem:[#allocation5 + $0x88] sm:$0xf0]  ;;  %v663_v24 = vor.u32 %v808_v19, %v662_v18  ;;  %v667_v25 = vor.u32 %v807_v20, %v664_v21  ;;  %v650_v27 = vld [vmem:[#allocation5 + $0x60] sm:$0xf]  ;;  %v804_v29 = vld [vmem:[#allocation5 + $0x64] sm:$0xf] }
  0x1f   :  { %274 = vmatpush.bf16.msra.mxu0 %v675_v12  ;;  %v671_v26 = vor.u32 %v809_v23, %v670_v22  ;;  %v805_v28 = vld [vmem:[#allocation5 + $0x68] sm:$0xf0]  ;;  %v652_v30 = vld [vmem:[#allocation5 + $0x6c] sm:$0xf0]  ;;  %v658_v31 = vld [vmem:[#allocation5 + $0x68] sm:$0xf] }
  0x20   :  { %287 = vmatpush.bf16.msra.mxu1 %v679_v16  ;;  %v806_v32 = vld [vmem:[#allocation5 + $0x70] sm:$0xf0]  ;;  %v651_v33 = vor.u32 %v805_v28, %v650_v27  ;;  %v655_v34 = vor.u32 %v804_v29, %v652_v30  ;;  %v638_v36 = vld [vmem:[#allocation5 + $0x48] sm:$0xf]  ;;  %v801_v38 = vld [vmem:[#allocation5 + $0x4c] sm:$0xf] }
  0x21   :  { %300 = vmatpush.bf16.msra.mxu2 %v683_v17  ;;  %v659_v35 = vor.u32 %v806_v32, %v658_v31  ;;  %v802_v37 = vld [vmem:[#allocation5 + $0x50] sm:$0xf0]  ;;  %v640_v39 = vld [vmem:[#allocation5 + $0x54] sm:$0xf0]  ;;  %v646_v40 = vld [vmem:[#allocation5 + $0x50] sm:$0xf] }
  0x22   :  { %v803_v41 = vld [vmem:[#allocation5 + $0x58] sm:$0xf0]  ;;  %v639_v42 = vor.u32 %v802_v37, %v638_v36  ;;  %v626_v43 = vld [vmem:[#allocation5 + $0x30] sm:$0xf]  ;;  %v643_v44 = vor.u32 %v801_v38, %v640_v39  ;;  %v798_v47 = vld [vmem:[#allocation5 + $0x34] sm:$0xf] }
  0x23   :  { %275 = vmatpush.bf16.msra.mxu0 %v663_v24  ;;  %v647_v45 = vor.u32 %v803_v41, %v646_v40  ;;  %v799_v46 = vld [vmem:[#allocation5 + $0x38] sm:$0xf0]  ;;  %v628_v49 = vld [vmem:[#allocation5 + $0x3c] sm:$0xf0]  ;;  %v634_v50 = vld [vmem:[#allocation5 + $0x38] sm:$0xf] }
  0x24   :  { %288 = vmatpush.bf16.msra.mxu1 %v667_v25  ;;  %v823_v48 = vld [vmem:[#allocation8 + $0x38] sm:$0xff]  ;;  %v800_v51 = vld [vmem:[#allocation5 + $0x40] sm:$0xf0]  ;;  %v822_v52 = vld [vmem:[#allocation8 + $0x30] sm:$0xff]  ;;  %v627_v53 = vor.u32 %v799_v46, %v626_v43  ;;  %v631_v55 = vor.u32 %v798_v47, %v628_v49  ;;  %s1040_s9 = smov [#allocation12]   ;;  %s583_s13 = sshll.u32 %s1122_s8, 4  ;;  %s584_s13 = int_to_ptr.hbm [resolvable:$true] %s583_s13 }
  0x25   :  { %301 = vmatpush.bf16.msra.mxu2 %v671_v26  ;;  %456 = vmatpush.bf16.msra.mxu3 %v823_v48  ;;  %v614_v54 = vld [vmem:[#allocation5 + $0x18] sm:$0xf]  ;;  %v635_v56 = vor.u32 %v800_v51, %v634_v50  ;;  %v796_v57 = vld [vmem:[#allocation5 + $0x20] sm:$0xf0]  ;;  %v795_v58 = vld [vmem:[#allocation5 + $0x1c] sm:$0xf] }
  0x26   :  { %v616_v59 = vld [vmem:[#allocation5 + $0x24] sm:$0xf0]  ;;  %v622_v60 = vld [vmem:[#allocation5 + $0x20] sm:$0xf]  ;;  %v797_v61 = vld [vmem:[#allocation5 + $0x28] sm:$0xf0]  ;;  %v615_v63 = vor.u32 %v796_v57, %v614_v54 }
  0x27   :  { %276 = vmatpush.bf16.msra.mxu0 %v651_v33  ;;  %v821_v62 = vld [vmem:[#allocation8 + $0x28] sm:$0xff]  ;;  %v619_v0 = vor.u32 %v795_v58, %v616_v59  ;;  %v623_v1 = vor.u32 %v797_v61, %v622_v60  ;;  %v602_v2 = vld [vmem:[#allocation5] sm:$0xf]  ;;  %v792_v4 = vld [vmem:[#allocation5 + $0x4] sm:$0xf]  ;;  %s581_s10 = sshll.u32 %s1040_s9, 4  ;;  %s582_s10 = int_to_ptr.vmem [resolvable:$true] %s581_s10 }
  0x28   :  { %289 = vmatpush.bf16.msra.mxu1 %v655_v34  ;;  %v793_v3 = vld [vmem:[#allocation5 + $0x8] sm:$0xf0]  ;;  %v604_v5 = vld [vmem:[#allocation5 + $0xc] sm:$0xf0]  ;;  %v610_v6 = vld [vmem:[#allocation5 + $0x8] sm:$0xf] }
  0x29   :  { %302 = vmatpush.bf16.msra.mxu2 %v659_v35  ;;  %457 = vmatpush.bf16.msra.mxu3 %v822_v52  ;;  %v794_v7 = vld [vmem:[#allocation5 + $0x10] sm:$0xf0]  ;;  %v820_v8 = vld [vmem:[#allocation8 + $0x20] sm:$0xff]  ;;  %v603_v9 = vor.u32 %v793_v3, %v602_v2  ;;  %v607_v10 = vor.u32 %v792_v4, %v604_v5  ;;  %v831_v12 = vld [vmem:[#allocation8 + $0x78] sm:$0xff]  ;;  %s1041_s16 = smov [#allocation11]   ;;  %s572_s1 = sshll.u32 %s1121_s7, 4  ;;  %s573_s1 = int_to_ptr.hbm [resolvable:$true] %s572_s1 }
  0x2a   :  { %v611_v11 = vor.u32 %v794_v7, %v610_v6  ;;  %v839_v13 = vld [vmem:[#allocation10 + $0x38] sm:$0xff]  ;;  %v830_v16 = vld [vmem:[#allocation8 + $0x70] sm:$0xff]  ;;  %v829_v18 = vld [vmem:[#allocation8 + $0x68] sm:$0xff]  ;;  %s570_s17 = sshll.u32 %s1041_s16, 4  ;;  %s571_s17 = int_to_ptr.vmem [resolvable:$true] %s570_s17 }
  0x2b   :  { %277 = vmatpush.bf16.msra.mxu0 %v639_v42  ;;  %v819_v14 = vld [vmem:[#allocation8 + $0x18] sm:$0xff]  ;;  %v838_v17 = vld [vmem:[#allocation10 + $0x30] sm:$0xff]  ;;  %v837_v19 = vld [vmem:[#allocation10 + $0x28] sm:$0xff] }
  0x2c   :  { %290 = vmatpush.bf16.msra.mxu1 %v643_v44  ;;  %v104_v15 = vld [vmem:[#allocation2] sm:$0xf]  ;;  %v828_v20 = vld [vmem:[#allocation8 + $0x60] sm:$0xff]  ;;  %v818_v24 = vld [vmem:[#allocation8 + $0x10] sm:$0xff] }
  0x2d   :  { %303 = vmatpush.bf16.msra.mxu2 %v647_v45  ;;  %458 = vmatpush.bf16.msra.mxu3 %v821_v62  ;;  %v836_v21 = vld [vmem:[#allocation10 + $0x20] sm:$0xff]  ;;  %v827_v22 = vld [vmem:[#allocation8 + $0x58] sm:$0xff]  ;;  %v826_v25 = vld [vmem:[#allocation8 + $0x50] sm:$0xff] }
  0x2e   :  { %v835_v23 = vld [vmem:[#allocation10 + $0x18] sm:$0xff]  ;;  %v834_v26 = vld [vmem:[#allocation10 + $0x10] sm:$0xff]  ;;  %v817_v27 = vld [vmem:[#allocation8 + $0x8] sm:$0xff] }
  0x2f   :  { %278 = vmatpush.bf16.msra.mxu0 %v627_v53  ;;  %v825_v28 = vld [vmem:[#allocation8 + $0x48] sm:$0xff]  ;;  %v816_v30 = vld [vmem:[#allocation8] sm:$0xff]  ;;  %v137_v33 = vld [vmem:[#allocation7] sm:$0x7] }
  0x30   :  { %291 = vmatpush.bf16.msra.mxu1 %v631_v55  ;;  %v833_v29 = vld [vmem:[#allocation10 + $0x8] sm:$0xff]  ;;  %v824_v31 = vld [vmem:[#allocation8 + $0x40] sm:$0xff]  ;;  %v139_v34 = vperm.slane %v137_v33, 0  ;;  %v140_v35 = vperm.slane %v137_v33, 1  ;;  %v141_v42 = vperm.slane %v137_v33, 2 }
  0x31   :  { %304 = vmatpush.bf16.msra.mxu2 %v635_v56  ;;  %459 = vmatpush.bf16.msra.mxu3 %v820_v8  ;;  %v832_v32 = vld [vmem:[#allocation10] sm:$0xff]  ;;  %v851_v55 = vld [vmem:[%s1120_s6] ss:$0 sm:$0xff] }
  0x32   :  { %v852_v59 = vld [vmem:[%s1118_s4] ss:$0 sm:$0xff] }
  0x33   :  { %279 = vmatpush.bf16.msra.mxu0 %v615_v63 }
  0x34   :  { %292 = vmatpush.bf16.msra.mxu1 %v619_v0 }
  0x35   :  { %305 = vmatpush.bf16.msra.mxu2 %v623_v1  ;;  %460 = vmatpush.bf16.msra.mxu3 %v819_v14 }
  0x37   :  { %280 = vmatpush.bf16.msra.mxu0 %v603_v9 }
  0x38   :  { %293 = vmatpush.bf16.msra.mxu1 %v607_v10 }
  0x39   :  { %306 = vmatpush.bf16.msra.mxu2 %v611_v11  ;;  %461 = vmatpush.bf16.msra.mxu3 %v818_v24 }
  0x3a   :  { %281 = vmatmul.bf16.vlgmr.msra.gmra.mxu0 %v104_v15 }
  0x3b   :  { %469 = vmatpush.bf16.msrb.mxu0 %v831_v12  ;;  %294 = vmatmul.bf16.vlgmr.msra.gmra.mxu1 %v104_v15 }
  0x3c   :  { %551 = vmatpush.bf16.msrb.mxu1 %v839_v13  ;;  %307 = vmatmul.bf16.vlgmr.msra.gmra.mxu2 %v104_v15 }
  0x3d   :  { %462 = vmatpush.bf16.msra.mxu3 %v817_v27 }
  0x3f   :  { %470 = vmatpush.bf16.msrb.mxu0 %v830_v16 }
  0x40   :  { %552 = vmatpush.bf16.msrb.mxu1 %v838_v17 }
  0x41   :  { %463 = vmatpush.bf16.msra.mxu3 %v816_v30 }
  0x43   :  { %471 = vmatpush.bf16.msrb.mxu0 %v829_v18 }
  0x44   :  { %553 = vmatpush.bf16.msrb.mxu1 %v837_v19 }
  0x47   :  { %472 = vmatpush.bf16.msrb.mxu0 %v828_v20 }
  0x48   :  { %554 = vmatpush.bf16.msrb.mxu1 %v836_v21 }
  0x4b   :  { %473 = vmatpush.bf16.msrb.mxu0 %v827_v22 }
  0x4c   :  { %555 = vmatpush.bf16.msrb.mxu1 %v835_v23 }
  0x4f   :  { %474 = vmatpush.bf16.msrb.mxu0 %v826_v25 }
  0x50   :  { %556 = vmatpush.bf16.msrb.mxu1 %v834_v26 }
  0x53   :  { %475 = vmatpush.bf16.msrb.mxu0 %v825_v28 }
  0x54   :  { %557 = vmatpush.bf16.msrb.mxu1 %v833_v29 }
  0x57   :  { %476 = vmatpush.bf16.msrb.mxu0 %v824_v31 }
  0x58   :  { %558 = vmatpush.bf16.msrb.mxu1 %v832_v32 }
  0xb7   :  { %v282_v36 = vpop.f32.mrf.mxu0 }
  0xb8   :  { %v283_v37 = vadd.f32 %v282_v36, %v139_v34  ;;  %v295_v38 = vpop.f32.mrf.mxu1 }
  0xb9   :  { %v296_v39 = vadd.f32 %v295_v38, %v140_v35 }
  0xba   :  { %v312_v40 = vmax.f32 %v283_v37, 0.0 }
  0xbb   :  { %v313_v41 = vmax.f32 %v296_v39, 0.0 }
  0xbd   :  { %v315_v43 = vpack.c.bf16 %v313_v41, %v312_v40 }
  0xbf   :  { %v308_v44 = vpop.f32.mrf.mxu2  ;;  %v284_v46 = vpop.f32.mrf.mxu0  ;;  %v354_v47 = vunpack.c.l.b16 %v315_v43  ;;  %v355_v48 = vunpack.c.h.b16 %v315_v43 }
  0xc0   :  { %v309_v45 = vadd.f32 %v308_v44, %v141_v42  ;;  %v297_v49 = vpop.f32.mrf.mxu1 }
  0xc1   :  { %v356_v51 = vpack.c.b16 %v354_v47, %v354_v47  ;;  %v357_v52 = vpack.c.b16 %v355_v48, %v355_v48 }
  0xc2   :  { %v314_v50 = vmax.f32 %v309_v45, 0.0 }
  0xc3   :  { %464 = vmatmul.bf16.vlgmr.msra.gmra.mxu3 %v356_v51  ;;  %477 = vmatmul.bf16.vlgmr.msrb.gmra.mxu0 %v357_v52 }
  0xc4   :  { %v316_v53 = vpack.c.bf16 %v314_v50, %v314_v50 }
  0xc6   :  { %559 = vmatmul.bf16.vlgmr.msrb.gmra.mxu1 %v316_v53 }
  0xc7   :  { %v310_v54 = vpop.f32.mrf.mxu2 }
 0x140   :  { %v478_v56 = vpop.f32.mrf.mxu0 }
 0x143   :  { %v560_v57 = vpop.f32.mrf.mxu1 }
 0x144   :  { %v561_v58 = vadd.f32 %v851_v55, %v560_v57 }
 0x146   :  { %564 = vst [vmem:[#allocation12] sm:$0xff] %v561_v58  ;;  %v465_v60 = vpop.f32.mrf.mxu3 }
 0x147   :  { %586 = dma.vmem_to_hbm [thread:$0]  %s582_s10, 128, %s584_s13, [#allocation13]   ;;  %v466_v61 = vadd.f32 %v852_v59, %v465_v60 }
 0x148   :  { %v480_v62 = vpop.f32.mrf.mxu0 }
 0x149   :  { %v479_v63 = vadd.f32 %v478_v56, %v466_v61 }
 0x14b   :  { %v562_v0 = vpop.f32.mrf.mxu1  ;;  %482 = vst [vmem:[#allocation11] sm:$0xff] %v479_v63 }
 0x14c   :  { %575 = dma.vmem_to_hbm [thread:$0]  %s571_s17, 128, %s573_s1, [#allocation4]  }
 0x14e   :  { %v467_v1 = vpop.f32.mrf.mxu3 }
 0x14f   :  { %1027 = dma.done.wait [#allocation4], 128  }
 0x150   :  { %1028 = vsyncadd [#allocation4], 4294967168 }
 0x151   :  { %1029 = dma.done.wait [#allocation13], 128  }
 0x152   :  { %1030 = vsyncadd [#allocation13], 4294967168 }
 0x153   :  { %595 = vsyncpa [#allocation3], 1 }
 0x154   :  { %596 = vsyncpa [#allocation6], 1 }
 0x155   :  { %597 = vsyncpa [#allocation9], 1 }
 0x156   :  { %598 = vsyncpa [#allocation4], 1 }
 0x157   :  { %599 = vsyncpa [#allocation13], 1 }

</bundles_post_ra>
